<compile_context>
chip_gen: v5e
topology: v5e:2x2
jax: 0.10.0
libtpu: 0.0.40
codegen_flags: <defaults>
</compile_context>

<pallas_src>
import functools

import numpy as np
import jax
import jax.numpy as jnp
from jax.experimental import pallas as pl
from jax.experimental.pallas import tpu as pltpu

LANE = 128      # lane width / channel & K padding quantum
SUBLANE = 8     # sublane quantum for the M (rows) dimension

# VMEM budget: every block here is < 2 MiB, but cap the scoped limit at 48 MiB
# so the same code stays safe on v7x (64 MiB physical) as well as v5e/v6e.
_VMEM_LIMIT = 48 * 1024 * 1024

_CompilerParams = getattr(pltpu, "CompilerParams", None) or getattr(
    pltpu, "TPUCompilerParams")


def _round_up(x, m):
    return (x + m - 1) // m * m


def _choose_m_tile(mp, cap=256):
    """Largest multiple of 8 that divides `mp`, is <= cap, and (when mp >= 16)
    leaves >= 2 grid steps so both v7x TensorCores get work.  For larger
    batches this converges to 128-256 row tiles (good MXU M fill on v5e/v6e)."""
    assert mp > 0 and mp % SUBLANE == 0, mp
    if mp <= SUBLANE:
        return mp
    limit = min(cap, mp // 2)
    limit -= limit % SUBLANE
    t = max(limit, SUBLANE)
    while mp % t:
        t -= SUBLANE
    return t


# ----------------------------------------------------------------------------
# Fused single-pass matmul + bias + (ReLU):  y = act(x @ w + b)
# Full K and full N per grid step (they fit VMEM with >50x headroom here);
# grid is over M row tiles only, marked "parallel".
# ----------------------------------------------------------------------------
def _matmul_bias_act_kernel(x_ref, w_ref, b_ref, o_ref, *, relu):
    y = jnp.dot(x_ref[...], w_ref[...], preferred_element_type=jnp.float32)
    y = y + b_ref[...]                       # f32 bias
    if relu:
        y = jnp.maximum(y, 0.0)
    o_ref[...] = y.astype(o_ref.dtype)


def fused_matmul(x, w, b, *, relu, out_dtype, m_cap=256):
    """x:(Mp,Kp) bf16, w:(Kp,Np) bf16, b:(1,Np) f32; Mp%8==0, Kp%128==0,
    Np%128==0 (lane-dense loads/stores, well-shaped MXU operands)."""
    mp, kp = x.shape
    kp2, np_ = w.shape
    assert kp == kp2 and b.shape == (1, np_)
    assert mp % SUBLANE == 0 and kp % LANE == 0 and np_ % LANE == 0
    tm = _choose_m_tile(mp, cap=m_cap)
    return pl.pallas_call(
        functools.partial(_matmul_bias_act_kernel, relu=relu),
        out_shape=jax.ShapeDtypeStruct((mp, np_), out_dtype),
        grid=(mp // tm,),
        in_specs=[
            pl.BlockSpec((tm, kp), lambda m: (m, 0)),
            pl.BlockSpec((kp, np_), lambda m: (0, 0)),
            pl.BlockSpec((1, np_), lambda m: (0, 0)),
        ],
        out_specs=pl.BlockSpec((tm, np_), lambda m: (m, 0)),
        compiler_params=_CompilerParams(
            dimension_semantics=("parallel",),
            vmem_limit_bytes=_VMEM_LIMIT),
    )(x, w, b)


# ----------------------------------------------------------------------------
# Fused FC stack:  x -> [fc_i -> ReLU]* -> last_fc   in ONE pallas_call.
# All FC weights stay resident in VMEM; full K per step; grid over M only.
# ----------------------------------------------------------------------------
def _fc_stack_kernel(*refs, n_hidden):
    x_ref, o_ref = refs[0], refs[-1]
    h = x_ref[...]                                        # bf16
    for i in range(n_hidden):
        w_ref, b_ref = refs[1 + 2 * i], refs[2 + 2 * i]
        y = jnp.dot(h, w_ref[...], preferred_element_type=jnp.float32)
        h = jnp.maximum(y + b_ref[...], 0.0).astype(jnp.bfloat16)
    w_ref, b_ref = refs[1 + 2 * n_hidden], refs[2 + 2 * n_hidden]
    y = jnp.dot(h, w_ref[...], preferred_element_type=jnp.float32) + b_ref[...]
    o_ref[...] = y.astype(o_ref.dtype)


def fused_fc_stack(x, layers, *, out_dtype):
    """x:(Mp,K0p) bf16.  layers: [(w,b), ...] hidden layers then last_fc;
    each w:(Kp_i,Np_i) bf16, b:(1,Np_i) f32 (all pre-padded to x128)."""
    mp, k0 = x.shape
    assert mp % SUBLANE == 0 and k0 % LANE == 0
    n_hidden = len(layers) - 1
    out_p = layers[-1][0].shape[1]
    tm = _choose_m_tile(mp, cap=512)
    in_specs = [pl.BlockSpec((tm, k0), lambda m: (m, 0))]
    args = [x]
    for w, b in layers:
        in_specs.append(pl.BlockSpec(w.shape, lambda m: (0, 0)))
        in_specs.append(pl.BlockSpec(b.shape, lambda m: (0, 0)))
        args += [w, b]
    return pl.pallas_call(
        functools.partial(_fc_stack_kernel, n_hidden=n_hidden),
        out_shape=jax.ShapeDtypeStruct((mp, out_p), out_dtype),
        grid=(mp // tm,),
        in_specs=in_specs,
        out_specs=pl.BlockSpec((tm, out_p), lambda m: (m, 0)),
        compiler_params=_CompilerParams(
            dimension_semantics=("parallel",),
            vmem_limit_bytes=_VMEM_LIMIT),
    )(*args)


# ----------------------------------------------------------------------------
# Packed im2col on *real* channels (tiny tensors; no 128-per-tap padding).
# Column order is (kh, kw, c), matching the conv weight-matrix row order.
# ----------------------------------------------------------------------------
def extract_patches(x_nhwc, KH, KW, stride, padding, OH, OW):
    pads = ((0, 0), (padding, padding), (padding, padding), (0, 0))
    xp = jnp.pad(x_nhwc, pads)
    cols = []
    for kh in range(KH):
        for kw in range(KW):
            cols.append(xp[:, kh:kh + stride * (OH - 1) + 1:stride,
                           kw:kw + stride * (OW - 1) + 1:stride, :])
    return jnp.concatenate(cols, axis=-1)      # (B, OH, OW, KH*KW*C)


# ----------------------------------------------------------------------------
# Parameter init (matches the module's __init__ semantics); all layout work
# (transpose / pad / flatten-order permutation / bf16 cast) hoisted here.
# ----------------------------------------------------------------------------
def xavier_uniform(key, shape):
    cout, cin, kh, kw = shape
    fan_in, fan_out = cin * kh * kw, cout * kh * kw
    limit = float(np.sqrt(6.0 / (fan_in + fan_out)))
    return jax.random.uniform(key, shape, jnp.float32, -limit, limit)


def init_cnn_params(key, cfg):
    """Returns (weights, plan, ref_params)."""
    weights = {"conv": [], "fc": []}
    plan = {"conv": []}
    ref = {"conv": [], "fc": []}

    cin = cfg["input_channels"]
    h, w = cfg["input_height"], cfg["input_width"]
    for cout, k, s, p in zip(cfg["n_channels"], cfg["kernel_sizes"],
                             cfg["strides"], cfg["paddings"]):
        key, sub = jax.random.split(key)
        wgt = xavier_uniform(sub, (cout, cin, k, k))        # torch OIHW
        bias = jnp.zeros((cout,), jnp.float32)              # conv.bias.fill_(0)
        ref["conv"].append((wgt, bias, s, p))

        OH = (h + 2 * p - k) // s + 1
        OW = (w + 2 * p - k) // s + 1
        K = k * k * cin                                     # packed patch K
        Kp = _round_up(K, LANE)
        cout_p = _round_up(cout, LANE)
        # (KH,KW,Cin,Cout) row-major (kh,kw,c) == im2col column order.
        wk = jnp.transpose(wgt, (2, 3, 1, 0)).reshape(K, cout)
        wk = jnp.pad(wk, ((0, Kp - K), (0, cout_p - cout))).astype(jnp.bfloat16)
        bk = jnp.pad(bias, (0, cout_p - cout)).reshape(1, cout_p).astype(jnp.float32)
        weights["conv"].append((wk, bk))
        plan["conv"].append(dict(KH=k, KW=k, stride=s, padding=p, OH=OH, OW=OW,
                                 K=K, Kp=Kp, cout=cout, cout_p=cout_p))
        h, w, cin = OH, OW, cout

    # ---- FC stack -----------------------------------------------------------
    C2, H2, W2 = cin, h, w
    conv_flat = C2 * H2 * W2
    added = cfg["added_fc_input_size"]
    fc_in = conv_flat + added
    fc_in_p = _round_up(fc_in, LANE)
    plan["added"] = added
    plan["fc_in_p"] = fc_in_p

    # Row permutation: torch NCHW .view(B,-1) index -> our (spatial, channel)
    # real-channel flatten index.  Applied to FC1 weight rows at init time.
    idx = np.arange(conv_flat)
    c = idx // (H2 * W2)
    p_sp = idx % (H2 * W2)
    dest = p_sp * C2 + c
    if added:
        dest = np.concatenate([dest, conv_flat + np.arange(added)])
    dest = jnp.asarray(dest, jnp.int32)

    init_w = cfg["init_w"]
    prev, prev_p, first = fc_in, fc_in_p, True
    for hidden in cfg["hidden_sizes"]:
        key, k1, k2 = jax.random.split(key, 3)
        wgt = jax.random.uniform(k1, (prev, hidden), jnp.float32, -init_w, init_w)
        bias = jax.random.uniform(k2, (hidden,), jnp.float32, -init_w, init_w)
        ref["fc"].append((wgt, bias))
        hidden_p = _round_up(hidden, LANE)
        wp = jnp.pad(wgt, ((0, 0), (0, hidden_p - hidden)))
        if first:
            wfull = jnp.zeros((prev_p, hidden_p), jnp.float32).at[dest].set(wp)
        else:
            wfull = jnp.pad(wp, ((0, prev_p - prev), (0, 0)))
        bp = jnp.pad(bias, (0, hidden_p - hidden)).reshape(1, hidden_p)
        weights["fc"].append((wfull.astype(jnp.bfloat16), bp.astype(jnp.float32)))
        prev, prev_p, first = hidden, hidden_p, False

    key, k1, k2 = jax.random.split(key, 3)
    out_size = cfg["output_size"]
    wgt = jax.random.uniform(k1, (prev, out_size), jnp.float32, -init_w, init_w)
    bias = jax.random.uniform(k2, (out_size,), jnp.float32, -init_w, init_w)
    ref["last_fc"] = (wgt, bias)
    out_p = _round_up(out_size, LANE)
    wp = jnp.pad(wgt, ((0, 0), (0, out_p - out_size)))
    if first:
        wfull = jnp.zeros((prev_p, out_p), jnp.float32).at[dest].set(wp)
    else:
        wfull = jnp.pad(wp, ((0, prev_p - prev), (0, 0)))
    bp = jnp.pad(bias, (0, out_p - out_size)).reshape(1, out_p)
    weights["fc"].append((wfull.astype(jnp.bfloat16), bp.astype(jnp.float32)))
    return weights, plan, ref


# ----------------------------------------------------------------------------
# Forward pass (mirrors CNN.forward; batch_norm_* are False -> no BN)
# ----------------------------------------------------------------------------
def cnn_forward(weights, x_flat, plan, cfg):
    B = x_flat.shape[0]
    C, H, W = cfg["input_channels"], cfg["input_height"], cfg["input_width"]
    conv_len = C * H * W

    # torch: view(B, C, H, W); go NHWC (real channels) once.
    h = jnp.transpose(x_flat[:, :conv_len].reshape(B, C, H, W), (0, 2, 3, 1))

    for (w_mat, b_row), lp in zip(weights["conv"], plan["conv"]):
        patches = extract_patches(h, lp["KH"], lp["KW"], lp["stride"],
                                  lp["padding"], lp["OH"], lp["OW"])
        M = B * lp["OH"] * lp["OW"]
        Mp = _round_up(M, SUBLANE)
        p2 = patches.reshape(M, lp["K"])
        p2 = jnp.pad(p2, ((0, Mp - M), (0, lp["Kp"] - lp["K"]))).astype(jnp.bfloat16)
        # One fused matmul+bias+ReLU per conv layer (single packed-K MXU pass).
        y = fused_matmul(p2, w_mat, b_row, relu=True, out_dtype=jnp.bfloat16)
        h = y[:M].reshape(B, lp["OH"], lp["OW"], lp["cout_p"])[..., :lp["cout"]]

    # Flatten (spatial-major, channel-minor); FC1 weight rows were permuted at
    # init so this equals torch's NCHW .view(B, -1) ordering.
    h = h.reshape(B, -1)
    if plan["added"]:
        extra = x_flat[:, conv_len:conv_len + plan["added"]].astype(h.dtype)
        h = jnp.concatenate([h, extra], axis=1)
    Mp = _round_up(B, SUBLANE)
    h = jnp.pad(h, ((0, Mp - B), (0, plan["fc_in_p"] - h.shape[1])))

    out = fused_fc_stack(h, weights["fc"], out_dtype=jnp.float32)
    return out[:B, :cfg["output_size"]]


# ----------------------------------------------------------------------------
# Pure-JAX f32 reference (exactly the PyTorch semantics) for validation.
# ----------------------------------------------------------------------------
def reference_forward(ref_params, x_flat, cfg):
    B = x_flat.shape[0]
    C, H, W = cfg["input_channels"], cfg["input_height"], cfg["input_width"]
    conv_len = C * H * W
    h = x_flat[:, :conv_len].reshape(B, C, H, W)
    for (wgt, bias, s, p) in ref_params["conv"]:
        h = jax.lax.conv_general_dilated(
            h, wgt, window_strides=(s, s), padding=[(p, p), (p, p)],
            dimension_numbers=("NCHW", "OIHW", "NCHW"))
        h = jnp.maximum(h + bias.reshape(1, -1, 1, 1), 0.0)
    h = h.reshape(B, -1)
    if cfg["added_fc_input_size"]:
        extra = x_flat[:, conv_len:conv_len + cfg["added_fc_input_size"]]
        h = jnp.concatenate([h, extra], axis=1)
    for (wgt, bias) in ref_params["fc"]:
        h = jnp.maximum(h @ wgt + bias, 0.0)
    wgt, bias = ref_params["last_fc"]
    return h @ wgt + bias


# ----------------------------------------------------------------------------
if __name__ == "__main__":
    cfg = dict(
        input_width=16,
        input_height=16,
        input_channels=4,
        output_size=5,
        kernel_sizes=[3, 3],
        n_channels=[8, 16],
        strides=[2, 2],
        paddings=[1, 1],
        hidden_sizes=[32],
        added_fc_input_size=3,
        init_w=1e-4,
    )

    key = jax.random.PRNGKey(0)
    key, pkey, xkey = jax.random.split(key, 3)
    weights, plan, ref_params = init_cnn_params(pkey, cfg)

    batch = 2
    flat_dim = (cfg["input_channels"] * cfg["input_height"] * cfg["input_width"]
                + cfg["added_fc_input_size"])
    x = jax.random.normal(xkey, (batch, flat_dim), jnp.float32)

    fwd = jax.jit(lambda wts, xin: cnn_forward(wts, xin, plan, cfg))
    out = jax.block_until_ready(fwd(weights, x))
    assert out.shape == (batch, cfg["output_size"]), out.shape
    assert bool(jnp.all(jnp.isfinite(out)))

    # Validate against the f32 reference (bf16 MXU operands -> relaxed tol).
    ref = jax.block_until_ready(reference_forward(ref_params, x, cfg))
    err = float(jnp.max(jnp.abs(out - ref)))
    tol = 1e-5 + 0.05 * float(jnp.max(jnp.abs(ref)))
    assert err <= tol, (err, tol)
    print("KERNEL_OK")
</pallas_src>

<mosaic_0001>
module attributes {stable_mosaic.version = 11 : i64} {
  func.func @_matmul_bias_act_kernel(%arg0: i32, %arg1: memref<64x128xbf16, #tpu.memory_space<vmem>>, %arg2: memref<128x128xbf16, #tpu.memory_space<vmem>>, %arg3: memref<1x128xf32, #tpu.memory_space<vmem>>, %arg4: memref<64x128xbf16, #tpu.memory_space<vmem>>) attributes {dimension_semantics = [#tpu.dimension_semantics<parallel>], iteration_bounds = array<i64: 2>, scalar_prefetch = 0 : i64, scratch_operands = 0 : i64, tpu.core_type = #tpu.core_type<tc>, window_params = [{transform_indices = @transform_0, window_bounds = array<i64: 64, 128>}, {pipeline_mode = #tpu.pipeline_mode<synchronous>, transform_indices = @transform_1, window_bounds = array<i64: 128, 128>}, {pipeline_mode = #tpu.pipeline_mode<synchronous>, transform_indices = @transform_2, window_bounds = array<i64: 1, 128>}, {transform_indices = @transform_3, window_bounds = array<i64: 64, 128>}]} {
    %c0 = arith.constant 0 : index
    %c0_0 = arith.constant 0 : index
    %0 = vector.load %arg1[%c0, %c0_0] : memref<64x128xbf16, #tpu.memory_space<vmem>>, vector<64x128xbf16>
    %c0_1 = arith.constant 0 : index
    %c0_2 = arith.constant 0 : index
    %1 = vector.load %arg2[%c0_1, %c0_2] : memref<128x128xbf16, #tpu.memory_space<vmem>>, vector<128x128xbf16>
    %cst = arith.constant dense<0.000000e+00> : vector<64x128xf32>
    %2 = tpu.matmul %0, %1, %cst {dimension_numbers = #tpu.dot_dimension_numbers<[1], [0], [0], [1], [0, 0, 1, 1], [], []>} : vector<64x128xbf16>, vector<128x128xbf16>, vector<64x128xf32> -> vector<64x128xf32>
    %c0_3 = arith.constant 0 : index
    %c0_4 = arith.constant 0 : index
    %3 = vector.load %arg3[%c0_3, %c0_4] : memref<1x128xf32, #tpu.memory_space<vmem>>, vector<1x128xf32>
    %4 = vector.broadcast %3 : vector<1x128xf32> to vector<64x128xf32>
    %5 = arith.addf %2, %4 : vector<64x128xf32>
    %cst_5 = arith.constant 0.000000e+00 : f32
    %6 = vector.broadcast %cst_5 : f32 to vector<64x128xf32>
    %7 = arith.maximumf %5, %6 : vector<64x128xf32>
    %8 = arith.truncf %7 : vector<64x128xf32> to vector<64x128xbf16>
    %c0_6 = arith.constant 0 : index
    %c0_7 = arith.constant 0 : index
    %9 = vector.load %arg4[%c0_6, %c0_7] : memref<64x128xbf16, #tpu.memory_space<vmem>>, vector<64x128xbf16>
    tpu.vector_store %arg4[%c0_6, %c0_7], %8 {strides = array<i32>} : memref<64x128xbf16, #tpu.memory_space<vmem>>, vector<64x128xbf16>,
    return
  }
  func.func @transform_0(%arg0: i32) -> (i32, i32) {
    %c0_i32 = arith.constant 0 : i32
    %c0_i32_0 = arith.constant 0 : i32
    return %arg0, %c0_i32 : i32, i32
  }
  func.func @transform_1(%arg0: i32) -> (i32, i32) {
    %c0_i32 = arith.constant 0 : i32
    %c0_i32_0 = arith.constant 0 : i32
    %c0_i32_1 = arith.constant 0 : i32
    return %c0_i32, %c0_i32_0 : i32, i32
  }
  func.func @transform_2(%arg0: i32) -> (i32, i32) {
    %c0_i32 = arith.constant 0 : i32
    %c0_i32_0 = arith.constant 0 : i32
    %c0_i32_1 = arith.constant 0 : i32
    return %c0_i32, %c0_i32_0 : i32, i32
  }
  func.func @transform_3(%arg0: i32) -> (i32, i32) {
    %c0_i32 = arith.constant 0 : i32
    %c0_i32_0 = arith.constant 0 : i32
    return %arg0, %c0_i32 : i32, i32
  }
}

module attributes {stable_mosaic.version = 11 : i64} {
  func.func @_matmul_bias_act_kernel(%arg0: i32, %arg1: memref<16x128xbf16, #tpu.memory_space<vmem>>, %arg2: memref<128x128xbf16, #tpu.memory_space<vmem>>, %arg3: memref<1x128xf32, #tpu.memory_space<vmem>>, %arg4: memref<16x128xbf16, #tpu.memory_space<vmem>>) attributes {dimension_semantics = [#tpu.dimension_semantics<parallel>], iteration_bounds = array<i64: 2>, scalar_prefetch = 0 : i64, scratch_operands = 0 : i64, tpu.core_type = #tpu.core_type<tc>, window_params = [{transform_indices = @transform_0, window_bounds = array<i64: 16, 128>}, {pipeline_mode = #tpu.pipeline_mode<synchronous>, transform_indices = @transform_1, window_bounds = array<i64: 128, 128>}, {pipeline_mode = #tpu.pipeline_mode<synchronous>, transform_indices = @transform_2, window_bounds = array<i64: 1, 128>}, {transform_indices = @transform_3, window_bounds = array<i64: 16, 128>}]} {
    %c0 = arith.constant 0 : index
    %c0_0 = arith.constant 0 : index
    %0 = vector.load %arg1[%c0, %c0_0] : memref<16x128xbf16, #tpu.memory_space<vmem>>, vector<16x128xbf16>
    %c0_1 = arith.constant 0 : index
    %c0_2 = arith.constant 0 : index
    %1 = vector.load %arg2[%c0_1, %c0_2] : memref<128x128xbf16, #tpu.memory_space<vmem>>, vector<128x128xbf16>
    %cst = arith.constant dense<0.000000e+00> : vector<16x128xf32>
    %2 = tpu.matmul %0, %1, %cst {dimension_numbers = #tpu.dot_dimension_numbers<[1], [0], [0], [1], [0, 0, 1, 1], [], []>} : vector<16x128xbf16>, vector<128x128xbf16>, vector<16x128xf32> -> vector<16x128xf32>
    %c0_3 = arith.constant 0 : index
    %c0_4 = arith.constant 0 : index
    %3 = vector.load %arg3[%c0_3, %c0_4] : memref<1x128xf32, #tpu.memory_space<vmem>>, vector<1x128xf32>
    %4 = vector.broadcast %3 : vector<1x128xf32> to vector<16x128xf32>
    %5 = arith.addf %2, %4 : vector<16x128xf32>
    %cst_5 = arith.constant 0.000000e+00 : f32
    %6 = vector.broadcast %cst_5 : f32 to vector<16x128xf32>
    %7 = arith.maximumf %5, %6 : vector<16x128xf32>
    %8 = arith.truncf %7 : vector<16x128xf32> to vector<16x128xbf16>
    %c0_6 = arith.constant 0 : index
    %c0_7 = arith.constant 0 : index
    %9 = vector.load %arg4[%c0_6, %c0_7] : memref<16x128xbf16, #tpu.memory_space<vmem>>, vector<16x128xbf16>
    tpu.vector_store %arg4[%c0_6, %c0_7], %8 {strides = array<i32>} : memref<16x128xbf16, #tpu.memory_space<vmem>>, vector<16x128xbf16>,
    return
  }
  func.func @transform_0(%arg0: i32) -> (i32, i32) {
    %c0_i32 = arith.constant 0 : i32
    %c0_i32_0 = arith.constant 0 : i32
    return %arg0, %c0_i32 : i32, i32
  }
  func.func @transform_1(%arg0: i32) -> (i32, i32) {
    %c0_i32 = arith.constant 0 : i32
    %c0_i32_0 = arith.constant 0 : i32
    %c0_i32_1 = arith.constant 0 : i32
    return %c0_i32, %c0_i32_0 : i32, i32
  }
  func.func @transform_2(%arg0: i32) -> (i32, i32) {
    %c0_i32 = arith.constant 0 : i32
    %c0_i32_0 = arith.constant 0 : i32
    %c0_i32_1 = arith.constant 0 : i32
    return %c0_i32, %c0_i32_0 : i32, i32
  }
  func.func @transform_3(%arg0: i32) -> (i32, i32) {
    %c0_i32 = arith.constant 0 : i32
    %c0_i32_0 = arith.constant 0 : i32
    return %arg0, %c0_i32 : i32, i32
  }
}

module attributes {stable_mosaic.version = 11 : i64} {
  func.func @_fc_stack_kernel(%arg0: i32, %arg1: memref<8x384xbf16, #tpu.memory_space<vmem>>, %arg2: memref<384x128xbf16, #tpu.memory_space<vmem>>, %arg3: memref<1x128xf32, #tpu.memory_space<vmem>>, %arg4: memref<128x128xbf16, #tpu.memory_space<vmem>>, %arg5: memref<1x128xf32, #tpu.memory_space<vmem>>, %arg6: memref<8x128xf32, #tpu.memory_space<vmem>>) attributes {dimension_semantics = [#tpu.dimension_semantics<parallel>], iteration_bounds = array<i64: 1>, scalar_prefetch = 0 : i64, scratch_operands = 0 : i64, tpu.core_type = #tpu.core_type<tc>, window_params = [{transform_indices = @transform_0, window_bounds = array<i64: 8, 384>}, {pipeline_mode = #tpu.pipeline_mode<synchronous>, transform_indices = @transform_1, window_bounds = array<i64: 384, 128>}, {pipeline_mode = #tpu.pipeline_mode<synchronous>, transform_indices = @transform_2, window_bounds = array<i64: 1, 128>}, {pipeline_mode = #tpu.pipeline_mode<synchronous>, transform_indices = @transform_3, window_bounds = array<i64: 128, 128>}, {pipeline_mode = #tpu.pipeline_mode<synchronous>, transform_indices = @transform_4, window_bounds = array<i64: 1, 128>}, {transform_indices = @transform_5, window_bounds = array<i64: 8, 128>}]} {
    %c0 = arith.constant 0 : index
    %c0_0 = arith.constant 0 : index
    %0 = vector.load %arg1[%c0, %c0_0] : memref<8x384xbf16, #tpu.memory_space<vmem>>, vector<8x384xbf16>
    %c0_1 = arith.constant 0 : index
    %c0_2 = arith.constant 0 : index
    %1 = vector.load %arg2[%c0_1, %c0_2] : memref<384x128xbf16, #tpu.memory_space<vmem>>, vector<384x128xbf16>
    %cst = arith.constant dense<0.000000e+00> : vector<8x128xf32>
    %2 = tpu.matmul %0, %1, %cst {dimension_numbers = #tpu.dot_dimension_numbers<[1], [0], [0], [1], [0, 0, 1, 1], [], []>} : vector<8x384xbf16>, vector<384x128xbf16>, vector<8x128xf32> -> vector<8x128xf32>
    %c0_3 = arith.constant 0 : index
    %c0_4 = arith.constant 0 : index
    %3 = vector.load %arg3[%c0_3, %c0_4] : memref<1x128xf32, #tpu.memory_space<vmem>>, vector<1x128xf32>
    %4 = vector.broadcast %3 : vector<1x128xf32> to vector<8x128xf32>
    %5 = arith.addf %2, %4 : vector<8x128xf32>
    %cst_5 = arith.constant 0.000000e+00 : f32
    %6 = vector.broadcast %cst_5 : f32 to vector<8x128xf32>
    %7 = arith.maximumf %5, %6 : vector<8x128xf32>
    %8 = arith.truncf %7 : vector<8x128xf32> to vector<8x128xbf16>
    %c0_6 = arith.constant 0 : index
    %c0_7 = arith.constant 0 : index
    %9 = vector.load %arg4[%c0_6, %c0_7] : memref<128x128xbf16, #tpu.memory_space<vmem>>, vector<128x128xbf16>
    %cst_8 = arith.constant dense<0.000000e+00> : vector<8x128xf32>
    %10 = tpu.matmul %8, %9, %cst_8 {dimension_numbers = #tpu.dot_dimension_numbers<[1], [0], [0], [1], [0, 0, 1, 1], [], []>} : vector<8x128xbf16>, vector<128x128xbf16>, vector<8x128xf32> -> vector<8x128xf32>
    %c0_9 = arith.constant 0 : index
    %c0_10 = arith.constant 0 : index
    %11 = vector.load %arg5[%c0_9, %c0_10] : memref<1x128xf32, #tpu.memory_space<vmem>>, vector<1x128xf32>
    %12 = vector.broadcast %11 : vector<1x128xf32> to vector<8x128xf32>
    %13 = arith.addf %10, %12 : vector<8x128xf32>
    %c0_11 = arith.constant 0 : index
    %c0_12 = arith.constant 0 : index
    %14 = vector.load %arg6[%c0_11, %c0_12] : memref<8x128xf32, #tpu.memory_space<vmem>>, vector<8x128xf32>
    tpu.vector_store %arg6[%c0_11, %c0_12], %13 {strides = array<i32>} : memref<8x128xf32, #tpu.memory_space<vmem>>, vector<8x128xf32>,
    return
  }
  func.func @transform_0(%arg0: i32) -> (i32, i32) {
    %c0_i32 = arith.constant 0 : i32
    %c0_i32_0 = arith.constant 0 : i32
    return %arg0, %c0_i32 : i32, i32
  }
  func.func @transform_1(%arg0: i32) -> (i32, i32) {
    %c0_i32 = arith.constant 0 : i32
    %c0_i32_0 = arith.constant 0 : i32
    %c0_i32_1 = arith.constant 0 : i32
    return %c0_i32, %c0_i32_0 : i32, i32
  }
  func.func @transform_2(%arg0: i32) -> (i32, i32) {
    %c0_i32 = arith.constant 0 : i32
    %c0_i32_0 = arith.constant 0 : i32
    %c0_i32_1 = arith.constant 0 : i32
    return %c0_i32, %c0_i32_0 : i32, i32
  }
  func.func @transform_3(%arg0: i32) -> (i32, i32) {
    %c0_i32 = arith.constant 0 : i32
    %c0_i32_0 = arith.constant 0 : i32
    %c0_i32_1 = arith.constant 0 : i32
    return %c0_i32, %c0_i32_0 : i32, i32
  }
  func.func @transform_4(%arg0: i32) -> (i32, i32) {
    %c0_i32 = arith.constant 0 : i32
    %c0_i32_0 = arith.constant 0 : i32
    %c0_i32_1 = arith.constant 0 : i32
    return %c0_i32, %c0_i32_0 : i32, i32
  }
  func.func @transform_5(%arg0: i32) -> (i32, i32) {
    %c0_i32 = arith.constant 0 : i32
    %c0_i32_0 = arith.constant 0 : i32
    return %arg0, %c0_i32 : i32, i32
  }
}

</mosaic_0001>

<bundles_post_ra>
// kernel: _lambda_.3
= control target key start
LH: loop header
LB: loop body
LE: loop exit
PB: predicated region body
PF: predicated region fallthrough
CT: control target
= control target key end

     0   :  { %s538_s12 = smov 0   ;;  %s589_s0 = inlined_call_operand.vmem [shape: bf16[128,128], index: 0, kind: input, shape index: {}]   ;;  %s590_s1 = inlined_call_operand.vmem [shape: bf16[128,128], index: 1, kind: input, shape index: {}]   ;;  %s591_s2 = inlined_call_operand.vmem [shape: f32[1,128], index: 2, kind: input, shape index: {}]   ;;  %s592_s3 = inlined_call_operand.vmem [shape: bf16[128,128], index: 3, kind: output, shape index: {}]  }
   0x1 LB: > { %s383_s13 = sadd.s32 4294967295, %s516_s12   ;;  %p387_p0 = scmp.ge.s32.totalorder %s516_s12, 1  ;;  %s516_s12 = sphi %s538_s12, %s13_s12  }
   0x2   : > { %p138_p1 = scmp.lt.s32.totalorder %s516_s12, 3 }
   0x4   : > { %p139_p2 = pnand %p387_p0, %p138_p1 }
   0x5   : > { %s388_s22 = sshll.u32 (!%p139_p2), %s383_s13, 3 }
   0x6   : > { %142 = sbr.rel (%p139_p2) target bundleno = 192 (0xc0), region = 32  ;;  %p163_p3 = scmp.lt.s32.totalorder (!%p139_p2), %s388_s22, 15 }
   0xb   : > { %v453_v0 = vld [vmem:[%s590_s1 + $0x38] sm:$0xff]  ;;  %v452_v1 = vld [vmem:[%s590_s1 + $0x30] sm:$0xff]  ;;  %v451_v2 = vld [vmem:[%s590_s1 + $0x28] sm:$0xff]  ;;  %s594_s22 = smov (!%p163_p3, %s388_s22), 15 }
   0xc   : > { %274 = vmatpush.bf16.msra.mxu0 %v453_v0  ;;  %477 = vmatpush.bf16.msra.mxu1 %v453_v0  ;;  %v450_v3 = vld [vmem:[%s590_s1 + $0x20] sm:$0xff]  ;;  %v449_v4 = vld [vmem:[%s590_s1 + $0x18] sm:$0xff]  ;;  %v448_v5 = vld [vmem:[%s590_s1 + $0x10] sm:$0xff]  ;;  %s389_s29 = sshll.u32 %s594_s22, 2 }
   0xd   : > { %478 = vmatpush.bf16.msra.mxu2 %v453_v0  ;;  %479 = vmatpush.bf16.msra.mxu3 %v453_v0  ;;  %v447_v6 = vld [vmem:[%s590_s1 + $0x8] sm:$0xff]  ;;  %v446_v7 = vld [vmem:[%s590_s1] sm:$0xff]  ;;  %s166_s7 = scalar_lea.vmem %s589_s0, %s389_s29  ;;  %s172_s13 = scalar_lea.vmem %s592_s3, %s389_s29 }
   0xe   : > { %v442_v8 = vld [vmem:[%s166_s7] sm:$0xff]  ;;  %v443_v9 = vld [vmem:[%s166_s7 + $0x8] sm:$0xff]  ;;  %v444_v10 = vld [vmem:[%s166_s7 + $0x10] sm:$0xff] }
   0xf   : > { %v445_v11 = vld [vmem:[%s166_s7 + $0x18] sm:$0xff]  ;;  %v509_v14 = vld [vmem:[%s591_s2] ss:$0 sm:$0xff] }
  0x10   : > { %275 = vmatpush.bf16.msra.mxu0 %v452_v1  ;;  %480 = vmatpush.bf16.msra.mxu1 %v452_v1 }
  0x11   : > { %481 = vmatpush.bf16.msra.mxu2 %v452_v1  ;;  %482 = vmatpush.bf16.msra.mxu3 %v452_v1 }
  0x14   : > { %276 = vmatpush.bf16.msra.mxu0 %v451_v2  ;;  %483 = vmatpush.bf16.msra.mxu1 %v451_v2 }
  0x15   : > { %484 = vmatpush.bf16.msra.mxu2 %v451_v2  ;;  %485 = vmatpush.bf16.msra.mxu3 %v451_v2 }
  0x18   : > { %277 = vmatpush.bf16.msra.mxu0 %v450_v3  ;;  %486 = vmatpush.bf16.msra.mxu1 %v450_v3 }
  0x19   : > { %487 = vmatpush.bf16.msra.mxu2 %v450_v3  ;;  %488 = vmatpush.bf16.msra.mxu3 %v450_v3 }
  0x1c   : > { %278 = vmatpush.bf16.msra.mxu0 %v449_v4  ;;  %489 = vmatpush.bf16.msra.mxu1 %v449_v4 }
  0x1d   : > { %490 = vmatpush.bf16.msra.mxu2 %v449_v4  ;;  %491 = vmatpush.bf16.msra.mxu3 %v449_v4 }
  0x20   : > { %279 = vmatpush.bf16.msra.mxu0 %v448_v5  ;;  %492 = vmatpush.bf16.msra.mxu1 %v448_v5 }
  0x21   : > { %493 = vmatpush.bf16.msra.mxu2 %v448_v5  ;;  %494 = vmatpush.bf16.msra.mxu3 %v448_v5 }
  0x24   : > { %280 = vmatpush.bf16.msra.mxu0 %v447_v6  ;;  %495 = vmatpush.bf16.msra.mxu1 %v447_v6 }
  0x25   : > { %496 = vmatpush.bf16.msra.mxu2 %v447_v6  ;;  %497 = vmatpush.bf16.msra.mxu3 %v447_v6 }
  0x28   : > { %281 = vmatpush.bf16.msra.mxu0 %v446_v7  ;;  %498 = vmatpush.bf16.msra.mxu1 %v446_v7 }
  0x29   : > { %499 = vmatpush.bf16.msra.mxu2 %v446_v7  ;;  %500 = vmatpush.bf16.msra.mxu3 %v446_v7 }
  0x2b   : > { %282 = vmatmul.bf16.vlgmr.msra.gmra.mxu0 %v442_v8  ;;  %287 = vmatmul.bf16.vlgmr.msra.gmra.mxu1 %v443_v9 }
  0x2c   : > { %292 = vmatmul.bf16.vlgmr.msra.gmra.mxu2 %v444_v10  ;;  %297 = vmatmul.bf16.vlgmr.msra.gmra.mxu3 %v445_v11 }
  0xa8   : > { %v283_v12 = vpop.f32.mrf.mxu0  ;;  %v288_v13 = vpop.f32.mrf.mxu1 }
  0xa9   : > { %v284_v15 = vadd.f32 %v509_v14, %v283_v12  ;;  %v289_v16 = vadd.f32 %v509_v14, %v288_v13 }
  0xab   : > { %v303_v23 = vmax.f32 %v284_v15, 0.0  ;;  %v305_v24 = vmax.f32 %v289_v16, 0.0 }
  0xaf   : > { %v293_v17 = vpop.f32.mrf.mxu2  ;;  %v298_v18 = vpop.f32.mrf.mxu3 }
  0xb0   : > { %v285_v19 = vpop.f32.mrf.mxu0  ;;  %v290_v20 = vpop.f32.mrf.mxu1  ;;  %v294_v29 = vadd.f32 %v509_v14, %v293_v17  ;;  %v299_v30 = vadd.f32 %v509_v14, %v298_v18 }
  0xb1   : > { %v286_v21 = vadd.f32 %v509_v14, %v285_v19  ;;  %v291_v22 = vadd.f32 %v509_v14, %v290_v20 }
  0xb2   : > { %v307_v35 = vmax.f32 %v294_v29, 0.0  ;;  %v309_v36 = vmax.f32 %v299_v30, 0.0 }
  0xb3   : > { %v304_v25 = vmax.f32 %v286_v21, 0.0  ;;  %v306_v26 = vmax.f32 %v291_v22, 0.0 }
  0xb5   : > { %v457_v27 = vpack.c.bf16 %v304_v25, %v303_v23  ;;  %v462_v28 = vpack.c.bf16 %v306_v26, %v305_v24 }
  0xb7   : > { %458 = vst [vmem:[%s172_s13] sm:$0xff] %v457_v27   ;;  %v295_v31 = vpop.f32.mrf.mxu2  ;;  %v300_v32 = vpop.f32.mrf.mxu3 }
  0xb8   : > { %474 = vst [vmem:[%s172_s13 + $0x8] sm:$0xff] %v462_v28   ;;  %v296_v33 = vadd.f32 %v509_v14, %v295_v31  ;;  %v301_v34 = vadd.f32 %v509_v14, %v300_v32 }
  0xba   : > { %v308_v37 = vmax.f32 %v296_v33, 0.0  ;;  %v310_v38 = vmax.f32 %v301_v34, 0.0 }
  0xbc   : > { %v467_v39 = vpack.c.bf16 %v308_v37, %v307_v35  ;;  %v472_v40 = vpack.c.bf16 %v310_v38, %v309_v36 }
  0xbe   : > { %475 = vst [vmem:[%s172_s13 + $0x10] sm:$0xff] %v467_v39  }
  0xbf   : > { %476 = vst [vmem:[%s172_s13 + $0x18] sm:$0xff] %v472_v40  }
  0xc0 PF: > { %s13_s12 = sadd.s32 1, %s516_s12  }
  0xc1   : > { %p10_p4 = scmp.ge.s32.totalorder %s13_s12, 4  }
  0xc3   :  { %12 = sbr.rel (!%p10_p4) target bundleno = 1 (0x1), region = 62 }

// kernel: _lambda_.4
= control target key start
LH: loop header
LB: loop body
LE: loop exit
PB: predicated region body
PF: predicated region fallthrough
CT: control target
= control target key end

     0   :  { %s424_s12 = smov 0   ;;  %s468_s0 = inlined_call_operand.vmem [shape: bf16[32,128], index: 0, kind: input, shape index: {}]   ;;  %s469_s1 = inlined_call_operand.vmem [shape: bf16[128,128], index: 1, kind: input, shape index: {}]   ;;  %s470_s2 = inlined_call_operand.vmem [shape: f32[1,128], index: 2, kind: input, shape index: {}]   ;;  %s471_s3 = inlined_call_operand.vmem [shape: bf16[32,128], index: 3, kind: output, shape index: {}]  }
   0x1 LB: > { %s326_s13 = sadd.s32 4294967295, %s402_s12   ;;  %p330_p0 = scmp.ge.s32.totalorder %s402_s12, 1  ;;  %s402_s12 = sphi %s424_s12, %s13_s12  }
   0x2   : > { %p138_p1 = scmp.lt.s32.totalorder %s402_s12, 3 }
   0x4   : > { %p139_p2 = pnand %p330_p0, %p138_p1 }
   0x5   : > { %s331_s22 = sshll.u32 (!%p139_p2), %s326_s13, 1 }
   0x6   : > { %142 = sbr.rel (%p139_p2) target bundleno = 184 (0xb8), region = 32  ;;  %p163_p3 = scmp.lt.s32.totalorder (!%p139_p2), %s331_s22, 3 }
   0xb   : > { %v381_v0 = vld [vmem:[%s469_s1 + $0x38] sm:$0xff]  ;;  %v380_v1 = vld [vmem:[%s469_s1 + $0x30] sm:$0xff]  ;;  %v379_v2 = vld [vmem:[%s469_s1 + $0x28] sm:$0xff]  ;;  %s473_s22 = smov (!%p163_p3, %s331_s22), 3 }
   0xc   : > { %250 = vmatpush.bf16.msra.mxu0 %v381_v0  ;;  %v378_v3 = vld [vmem:[%s469_s1 + $0x20] sm:$0xff]  ;;  %v377_v4 = vld [vmem:[%s469_s1 + $0x18] sm:$0xff]  ;;  %v376_v5 = vld [vmem:[%s469_s1 + $0x10] sm:$0xff]  ;;  %s332_s29 = sshll.u32 %s473_s22, 2 }
   0xd   : > { %v375_v6 = vld [vmem:[%s469_s1 + $0x8] sm:$0xff]  ;;  %v374_v7 = vld [vmem:[%s469_s1] sm:$0xff]  ;;  %s166_s7 = scalar_lea.vmem %s468_s0, %s332_s29  ;;  %s172_s13 = scalar_lea.vmem %s471_s3, %s332_s29 }
   0xe   : > { %v373_v8 = vld [vmem:[%s166_s7] sm:$0xff] }
   0xf   : > { %v395_v10 = vld [vmem:[%s470_s2] ss:$0 sm:$0xff] }
  0x10   : > { %251 = vmatpush.bf16.msra.mxu0 %v380_v1 }
  0x14   : > { %252 = vmatpush.bf16.msra.mxu0 %v379_v2 }
  0x18   : > { %253 = vmatpush.bf16.msra.mxu0 %v378_v3 }
  0x1c   : > { %254 = vmatpush.bf16.msra.mxu0 %v377_v4 }
  0x20   : > { %255 = vmatpush.bf16.msra.mxu0 %v376_v5 }
  0x24   : > { %256 = vmatpush.bf16.msra.mxu0 %v375_v6 }
  0x28   : > { %257 = vmatpush.bf16.msra.mxu0 %v374_v7 }
  0x2b   : > { %258 = vmatmul.bf16.vlgmr.msra.gmra.mxu0 %v373_v8 }
  0xa8   : > { %v259_v9 = vpop.f32.mrf.mxu0 }
  0xa9   : > { %v260_v11 = vadd.f32 %v395_v10, %v259_v9 }
  0xab   : > { %v264_v14 = vmax.f32 %v260_v11, 0.0 }
  0xb0   : > { %v261_v12 = vpop.f32.mrf.mxu0 }
  0xb1   : > { %v262_v13 = vadd.f32 %v395_v10, %v261_v12 }
  0xb3   : > { %v265_v15 = vmax.f32 %v262_v13, 0.0 }
  0xb5   : > { %v385_v16 = vpack.c.bf16 %v265_v15, %v264_v14 }
  0xb7   : > { %386 = vst [vmem:[%s172_s13] sm:$0xff] %v385_v16  }
  0xb8 PF: > { %s13_s12 = sadd.s32 1, %s402_s12  }
  0xb9   : > { %p10_p4 = scmp.ge.s32.totalorder %s13_s12, 4  }
  0xbb   :  { %12 = sbr.rel (!%p10_p4) target bundleno = 1 (0x1), region = 62 }

// kernel: _lambda_.5
= control target key start
LH: loop header
LB: loop body
LE: loop exit
PB: predicated region body
PF: predicated region fallthrough
CT: control target
= control target key end

     0   :  { %s659_s1 = inlined_call_operand.vmem [shape: bf16[384,128], index: 1, kind: input, shape index: {}]   ;;  %s660_s3 = inlined_call_operand.vmem [shape: bf16[128,128], index: 3, kind: input, shape index: {}]   ;;  %s661_s2 = inlined_call_operand.vmem [shape: f32[1,128], index: 2, kind: input, shape index: {}]   ;;  %s662_s0 = inlined_call_operand.vmem [shape: bf16[8,384], index: 0, kind: input, shape index: {}]   ;;  %s663_s4 = inlined_call_operand.vmem [shape: f32[1,128], index: 4, kind: input, shape index: {}]   ;;  %s664_s5 = inlined_call_operand.vmem [shape: f32[8,128], index: 5, kind: output, shape index: {}]  }
   0x1   :  { %v491_v0 = vld [vmem:[%s659_s1 + $0x38] sm:$0xff]  ;;  %v490_v3 = vld [vmem:[%s659_s1 + $0x30] sm:$0xff]  ;;  %v489_v6 = vld [vmem:[%s659_s1 + $0x28] sm:$0xff] }
   0x2   :  { %v499_v1 = vld [vmem:[%s659_s1 + $0x78] sm:$0xff]  ;;  %229 = vmatpush.bf16.msra.mxu0 %v491_v0  ;;  %v498_v4 = vld [vmem:[%s659_s1 + $0x70] sm:$0xff]  ;;  %v497_v7 = vld [vmem:[%s659_s1 + $0x68] sm:$0xff] }
   0x3   :  { %v507_v2 = vld [vmem:[%s659_s1 + $0xb8] sm:$0xff]  ;;  %242 = vmatpush.bf16.msra.mxu1 %v499_v1  ;;  %v506_v5 = vld [vmem:[%s659_s1 + $0xb0] sm:$0xff]  ;;  %v505_v8 = vld [vmem:[%s659_s1 + $0xa8] sm:$0xff] }
   0x4   :  { %255 = vmatpush.bf16.msra.mxu2 %v507_v2  ;;  %v515_v9 = vld [vmem:[%s660_s3 + $0x38] sm:$0xff]  ;;  %v488_v10 = vld [vmem:[%s659_s1 + $0x20] sm:$0xff]  ;;  %v514_v13 = vld [vmem:[%s660_s3 + $0x30] sm:$0xff] }
   0x5   :  { %v496_v11 = vld [vmem:[%s659_s1 + $0x60] sm:$0xff]  ;;  %338 = vmatpush.bf16.msra.mxu3 %v515_v9  ;;  %v487_v14 = vld [vmem:[%s659_s1 + $0x18] sm:$0xff]  ;;  %v513_v17 = vld [vmem:[%s660_s3 + $0x28] sm:$0xff] }
   0x6   :  { %230 = vmatpush.bf16.msra.mxu0 %v490_v3  ;;  %v504_v12 = vld [vmem:[%s659_s1 + $0xa0] sm:$0xff]  ;;  %v495_v15 = vld [vmem:[%s659_s1 + $0x58] sm:$0xff]  ;;  %v486_v18 = vld [vmem:[%s659_s1 + $0x10] sm:$0xff] }
   0x7   :  { %243 = vmatpush.bf16.msra.mxu1 %v498_v4  ;;  %v503_v16 = vld [vmem:[%s659_s1 + $0x98] sm:$0xff]  ;;  %v494_v19 = vld [vmem:[%s659_s1 + $0x50] sm:$0xff]  ;;  %v512_v21 = vld [vmem:[%s660_s3 + $0x20] sm:$0xff] }
   0x8   :  { %256 = vmatpush.bf16.msra.mxu2 %v506_v5  ;;  %v502_v20 = vld [vmem:[%s659_s1 + $0x90] sm:$0xff]  ;;  %v485_v22 = vld [vmem:[%s659_s1 + $0x8] sm:$0xff]  ;;  %v20_v24 = vld [vmem:[%s662_s0] sm:$0xff] }
   0x9   :  { %339 = vmatpush.bf16.msra.mxu3 %v514_v13  ;;  %v493_v23 = vld [vmem:[%s659_s1 + $0x48] sm:$0xff]  ;;  %v511_v27 = vld [vmem:[%s660_s3 + $0x18] sm:$0xff]  ;;  %v76_v28 = vunpack.c.l.b16 %v20_v24  ;;  %v77_v29 = vunpack.c.h.b16 %v20_v24  ;;  %v484_v30 = vld [vmem:[%s659_s1] sm:$0xff] }
   0xa   :  { %231 = vmatpush.bf16.msra.mxu0 %v489_v6  ;;  %v501_v25 = vld [vmem:[%s659_s1 + $0x88] sm:$0xff]  ;;  %v492_v31 = vld [vmem:[%s659_s1 + $0x40] sm:$0xff]  ;;  %v510_v37 = vld [vmem:[%s660_s3 + $0x10] sm:$0xff] }
   0xb   :  { %244 = vmatpush.bf16.msra.mxu1 %v497_v7  ;;  %v21_v26 = vld [vmem:[%s662_s0 + $0x8] sm:$0xf]  ;;  %v500_v33 = vld [vmem:[%s659_s1 + $0x80] sm:$0xff]  ;;  %v79_v34 = vpack.c.b16 %v76_v28, %v76_v28  ;;  %v80_v35 = vpack.c.b16 %v77_v29, %v77_v29 }
   0xc   :  { %257 = vmatpush.bf16.msra.mxu2 %v505_v8  ;;  %v78_v32 = vunpack.c.l.b16 %v21_v26  ;;  %v509_v38 = vld [vmem:[%s660_s3 + $0x8] sm:$0xff]  ;;  %v508_v39 = vld [vmem:[%s660_s3] sm:$0xff] }
   0xd   :  { %340 = vmatpush.bf16.msra.mxu3 %v513_v17  ;;  %v516_v40 = vld [vmem:[%s661_s2] ss:$0 sm:$0xff] }
   0xe   :  { %232 = vmatpush.bf16.msra.mxu0 %v488_v10  ;;  %v81_v36 = vpack.c.b16 %v78_v32, %v78_v32  ;;  %v517_v52 = vld [vmem:[%s663_s4] ss:$0 sm:$0xff] }
   0xf   :  { %245 = vmatpush.bf16.msra.mxu1 %v496_v11 }
  0x10   :  { %258 = vmatpush.bf16.msra.mxu2 %v504_v12 }
  0x11   :  { %341 = vmatpush.bf16.msra.mxu3 %v512_v21 }
  0x12   :  { %233 = vmatpush.bf16.msra.mxu0 %v487_v14 }
  0x13   :  { %246 = vmatpush.bf16.msra.mxu1 %v495_v15 }
  0x14   :  { %259 = vmatpush.bf16.msra.mxu2 %v503_v16 }
  0x15   :  { %342 = vmatpush.bf16.msra.mxu3 %v511_v27 }
  0x16   :  { %234 = vmatpush.bf16.msra.mxu0 %v486_v18 }
  0x17   :  { %247 = vmatpush.bf16.msra.mxu1 %v494_v19 }
  0x18   :  { %260 = vmatpush.bf16.msra.mxu2 %v502_v20 }
  0x19   :  { %343 = vmatpush.bf16.msra.mxu3 %v510_v37 }
  0x1a   :  { %235 = vmatpush.bf16.msra.mxu0 %v485_v22 }
  0x1b   :  { %248 = vmatpush.bf16.msra.mxu1 %v493_v23 }
  0x1c   :  { %261 = vmatpush.bf16.msra.mxu2 %v501_v25 }
  0x1d   :  { %344 = vmatpush.bf16.msra.mxu3 %v509_v38 }
  0x1e   :  { %236 = vmatpush.bf16.msra.mxu0 %v484_v30 }
  0x1f   :  { %249 = vmatpush.bf16.msra.mxu1 %v492_v31 }
  0x20   :  { %262 = vmatpush.bf16.msra.mxu2 %v500_v33 }
  0x21   :  { %237 = vmatmul.bf16.vlgmr.msra.gmra.mxu0 %v79_v34  ;;  %345 = vmatpush.bf16.msra.mxu3 %v508_v39 }
  0x22   :  { %250 = vmatmul.bf16.vlgmr.msra.gmra.mxu1 %v80_v35 }
  0x23   :  { %263 = vmatmul.bf16.vlgmr.msra.gmra.mxu2 %v81_v36 }
  0x9e   :  { %v238_v41 = vpop.f32.mrf.mxu0 }
  0x9f   :  { %v251_v42 = vpop.f32.mrf.mxu1  ;;  %v239_v43 = vadd.f32 %v516_v40, %v238_v41 }
  0xa1   :  { %v252_v44 = vadd.f32 %v251_v42, %v239_v43 }
  0xa6   :  { %v264_v45 = vpop.f32.mrf.mxu2  ;;  %v240_v47 = vpop.f32.mrf.mxu0 }
  0xa7   :  { %v265_v46 = vadd.f32 %v264_v45, %v252_v44  ;;  %v253_v48 = vpop.f32.mrf.mxu1 }
  0xa9   :  { %v268_v49 = vmax.f32 %v265_v46, 0.0 }
  0xab   :  { %v269_v50 = vpack.c.bf16 %v268_v49, %v268_v49 }
  0xad   :  { %346 = vmatmul.bf16.vlgmr.msra.gmra.mxu3 %v269_v50 }
  0xae   :  { %v266_v51 = vpop.f32.mrf.mxu2 }
 0x130   :  { %v347_v53 = vpop.f32.mrf.mxu3 }
 0x131   :  { %v348_v54 = vadd.f32 %v517_v52, %v347_v53 }
 0x133   :  { %351 = vst [vmem:[%s664_s5] sm:$0xff] %v348_v54 }
 0x138   :  { %v349_v55 = vpop.f32.mrf.mxu3 }

</bundles_post_ra>
